<compile_context>
chip_gen: v7x
topology: tpu7x:2x2x1
jax: 0.10.0
libtpu: 0.0.40
codegen_flags: <defaults>
</compile_context>

<pallas_src>
import math

import jax
import jax.numpy as jnp
from jax import lax
from jax.experimental import pallas as pl
from jax.experimental.pallas import tpu as pltpu


# ----------------------------------------------------------------------------
# Pallas kernel 1: stick-breaking attention
#   q: (B, T, K, Ah)    k, v: (B, ctx, Ah)    ->    y: (B, T, K, Ah)
#   grid = (B, K), K innermost; all H heads handled inside one grid step.
# ----------------------------------------------------------------------------
def stickbreaking_att_pallas(q, k, v, *, n_head):
    B, T, K, Ah = q.shape
    ctx = k.shape[1]
    assert Ah % n_head == 0
    H = n_head
    D = Ah // H
    scale = 1.0 / math.sqrt(D)
    off = ctx - T  # history offset for the causal mask

    # (B, T, K, Ah) -> (B, K, T, Ah) so the block's minor dims are (T, Ah).
    q4 = jnp.transpose(q, (0, 2, 1, 3))

    def kernel(q_ref, k_ref, v_ref, o_ref):
        # Causal mask (T, ctx): key j visible to query i iff j <= i + off.
        row = lax.broadcasted_iota(jnp.int32, (T, ctx), 0)
        col = lax.broadcasted_iota(jnp.int32, (T, ctx), 1)
        causal = (col <= row + off).astype(jnp.float32)

        # cum_weight (ctx, ctx): strictly lower triangular (cw[j, t] = 1 iff j > t),
        # generated in-kernel instead of being streamed from HBM / double-buffered
        # in VMEM.
        jj = lax.broadcasted_iota(jnp.int32, (ctx, ctx), 0)
        tt = lax.broadcasted_iota(jnp.int32, (ctx, ctx), 1)
        cw = (jj > tt).astype(jnp.float32)
        # TODO(synk): replace this materialized (ctx,ctx) matrix + MXU matmul by an
        #             XLU suffix-scan (rowsum - inclusive prefix sum of log_beta) and
        #             add a ctx-tiled flash-style variant for long histories.

        for h in range(H):  # static unroll over heads (single grid step for all H)
            sl = slice(h * D, (h + 1) * D)
            qh = q_ref[0, 0, :, sl].astype(jnp.bfloat16)   # (T, D)
            kh = k_ref[0, :, sl].astype(jnp.bfloat16)      # (ctx, D)
            vh = v_ref[0, :, sl].astype(jnp.bfloat16)      # (ctx, D)

            # logits = q @ k^T / sqrt(D)   (bf16 MXU inputs, f32 accumulation)
            logits = lax.dot_general(
                qh, kh, (((1,), (1,)), ((), ())),
                preferred_element_type=jnp.float32) * scale          # (T, ctx)

            # One exp(-|x|) shared by sigmoid(x) and log_sigmoid(-x); elementwise
            # math kept in f32 (v5e-safe).
            e = jnp.exp(-jnp.abs(logits))
            inv = pl.reciprocal(1.0 + e, approx=True)
            sig = jnp.where(logits >= 0.0, inv, e * inv)             # sigmoid(logits)
            lsb = -(jnp.maximum(logits, 0.0) + jnp.log1p(e))         # log_sigmoid(-logits)

            # masked_fill(mask==0, 0) == multiply by {0,1} mask. NOTE: this is only
            # equivalent because logits stay finite; any future -inf biasing of the
            # logits must switch back to jnp.where to avoid 0*inf = NaN.
            z = sig * causal
            log_beta = lsb * causal

            # re_cum[i, t] = sum_{j > t} log_beta[i, j]  (kept in f32 for accuracy)
            re_cum = lax.dot_general(
                log_beta, cw, (((1,), (0,)), ((), ())),
                preferred_element_type=jnp.float32)                  # (T, ctx)

            att = z * jnp.exp(re_cum)

            yh = lax.dot_general(
                att.astype(jnp.bfloat16), vh, (((1,), (0,)), ((), ())),
                preferred_element_type=jnp.float32)                  # (T, D)

            # Per-head static slice store into the lane-dense (T, Ah) output slab;
            # the output block DMA to HBM is fully dense.
            o_ref[0, 0, :, sl] = yh.astype(o_ref.dtype)

    out = pl.pallas_call(
        kernel,
        out_shape=jax.ShapeDtypeStruct((B, K, T, Ah), q.dtype),
        grid_spec=pltpu.PrefetchScalarGridSpec(
            num_scalar_prefetch=0,
            # K innermost: the k/v block index depends only on b, so the K/V DMA is
            # skipped (reused) across the top_k expert slots.
            grid=(B, K),
            in_specs=[
                pl.BlockSpec((1, 1, T, Ah), lambda b, kk: (b, kk, 0, 0)),
                pl.BlockSpec((1, ctx, Ah), lambda b, kk: (b, 0, 0)),
                pl.BlockSpec((1, ctx, Ah), lambda b, kk: (b, 0, 0)),
            ],
            out_specs=pl.BlockSpec((1, 1, T, Ah), lambda b, kk: (b, kk, 0, 0)),
        ),
        compiler_params=pltpu.CompilerParams(
            dimension_semantics=("parallel", "arbitrary")),
    )(q4, k, v)

    return jnp.transpose(out, (0, 2, 1, 3))  # (B, T, K, Ah)


def stickbreaking_att_ref(q, k, v, mask, cum_weight):
    """Pure-JAX reference of the torch.jit.script function, with the same
    bf16-at-the-MXU casts as the Pallas kernel so the comparison is apples-to-apples."""
    d = k.shape[-1]
    logits = jnp.einsum('bikhd,bjhd->bkhij',
                        q.astype(jnp.bfloat16), k.astype(jnp.bfloat16),
                        preferred_element_type=jnp.float32) / math.sqrt(d)
    m = (mask == 0)[None, None, None]
    z = jnp.where(m, 0.0, jax.nn.sigmoid(logits))
    log_beta = jnp.where(m, 0.0, jax.nn.log_sigmoid(-logits))
    re_cum = jnp.einsum('bnhij,jk->bnhik', log_beta, cum_weight, precision='highest')
    att = z * jnp.exp(re_cum)
    return jnp.einsum('bkhij,bjhd->bikhd',
                      att.astype(jnp.bfloat16), v.astype(jnp.bfloat16),
                      preferred_element_type=jnp.float32)


# ----------------------------------------------------------------------------
# Pallas kernel 2: fused k_proj/v_proj nn.Linear:  y = x @ W^T + b
# ----------------------------------------------------------------------------
def _fit_tile(dim, target):
    """Use `target` if it tiles `dim` exactly, otherwise fall back to the full dim."""
    if dim <= target or dim % target != 0:
        return dim
    return target


def fused_linear_pallas(x2d, w, b, *, tm=256, tn=256, tk=512):
    """x2d: (N, Cin); w: (Cout, Cin) torch nn.Linear layout; b: (Cout,).
    Tiled grid (parallel, parallel, arbitrary) with an f32 VMEM accumulator.
    Tile caps 256/256/512 keep the double-buffered working set inside v7x's
    smaller scoped-VMEM budget while still being (8,128)-aligned."""
    N, Cin = x2d.shape
    Cout = w.shape[0]
    tm = _fit_tile(N, tm)
    tn = _fit_tile(Cout, tn)
    tk = _fit_tile(Cin, tk)

    def kernel(x_ref, w_ref, b_ref, o_ref, acc_ref):
        kk = pl.program_id(2)

        @pl.when(kk == 0)
        def _():
            acc_ref[...] = jnp.zeros_like(acc_ref)

        # bf16 MXU inputs, f32 accumulation; w is consumed in its (Cout, Cin)
        # layout (contract dim 1 of both operands) -> no JAX-side transpose copy.
        acc_ref[...] += lax.dot_general(
            x_ref[...].astype(jnp.bfloat16), w_ref[...].astype(jnp.bfloat16),
            (((1,), (1,)), ((), ())), preferred_element_type=jnp.float32)

        @pl.when(kk == pl.num_programs(2) - 1)
        def _():
            o_ref[...] = (acc_ref[...] + b_ref[...]).astype(o_ref.dtype)

    return pl.pallas_call(
        kernel,
        out_shape=jax.ShapeDtypeStruct((N, Cout), x2d.dtype),
        grid_spec=pltpu.PrefetchScalarGridSpec(
            num_scalar_prefetch=0,
            grid=(N // tm, Cout // tn, Cin // tk),
            in_specs=[
                pl.BlockSpec((tm, tk), lambda i, j, kk: (i, kk)),
                pl.BlockSpec((tn, tk), lambda i, j, kk: (j, kk)),
                pl.BlockSpec((1, tn), lambda i, j, kk: (0, j)),
            ],
            out_specs=pl.BlockSpec((tm, tn), lambda i, j, kk: (i, j)),
            scratch_shapes=[pltpu.VMEM((tm, tn), jnp.float32)],
        ),
        compiler_params=pltpu.CompilerParams(
            dimension_semantics=("parallel", "parallel", "arbitrary")),
    )(x2d, w, b.reshape(1, Cout))


def linear_ref(x2d, w, b):
    # bf16-matched pure-JAX reference of the fused projection.
    return jnp.dot(x2d.astype(jnp.bfloat16), jnp.transpose(w).astype(jnp.bfloat16),
                   preferred_element_type=jnp.float32) + b


# ----------------------------------------------------------------------------
# Simplified deterministic MoE (q_proj.map / q_proj.reduce)
# TODO(synk): the real moe/singlemoe/distributed_moe module code is not provided;
#             this is a deterministic dense top-k MoE with the same map/reduce
#             interface and shapes. The data-dependent expert gather stays in JAX;
#             a scalar-prefetch grouped-matmul Pallas kernel is the long-term path.
# ----------------------------------------------------------------------------
def moe_map(x, gate_w, expert_w_in, top_k):
    # x: (B,T,C); gate_w: (C,E); expert_w_in: (E,C,Ah)
    logits = jnp.einsum('btc,ce->bte', x, gate_w)
    top_vals, top_idx = lax.top_k(logits, top_k)             # (B,T,K)
    gates = jax.nn.softmax(top_vals, axis=-1)                 # (B,T,K)
    w_sel = expert_w_in[top_idx]                              # (B,T,K,C,Ah)
    q = jnp.einsum('btc,btkch->btkh', x, w_sel)               # (B,T,K,Ah)
    aux_loss = jnp.float32(0.0)
    return q, gates, top_idx, aux_loss


def moe_reduce(y, gates, top_idx, expert_w_out):
    # y: (B,T,K,Ah); expert_w_out: (E,Ah,C)
    w_sel = expert_w_out[top_idx]                             # (B,T,K,Ah,C)
    out = jnp.einsum('btkh,btkhc->btkc', y, w_sel)            # (B,T,K,C)
    return jnp.einsum('btk,btkc->btc', gates, out)            # (B,T,C)


# ----------------------------------------------------------------------------
# SparseCausalSelfAttention forward
# ----------------------------------------------------------------------------
def sparse_causal_self_attention(params, x, hidden, *, n_head, top_k, use_pallas=True):
    B, T, C = x.shape
    att_hidden = params["k_w"].shape[0]
    head_size = att_hidden // n_head

    # q_proj.map
    q, gates, top_idx, aux_loss = moe_map(x, params["gate_w"], params["expert_w_in"], top_k)

    # fused k_proj / v_proj (one Pallas matmul on a concatenated weight)
    x2d = x.reshape(B * T, C)
    w_kv = jnp.concatenate([params["k_w"], params["v_w"]], axis=0)    # (2*Ah, C)
    b_kv = jnp.concatenate([params["k_b"], params["v_b"]], axis=0)    # (2*Ah,)
    if use_pallas:
        kv = fused_linear_pallas(x2d, w_kv, b_kv)
    else:
        kv = linear_ref(x2d, w_kv, b_kv).astype(x.dtype)
    k = kv[:, :att_hidden].reshape(B, T, att_hidden)
    v = kv[:, att_hidden:].reshape(B, T, att_hidden)

    # add_history
    if hidden is not None:
        k_hist, v_hist = hidden
        k = jnp.concatenate([k_hist, k], axis=1)
        v = jnp.concatenate([v_hist, v], axis=1)
    new_hidden = (k, v)
    ctx = k.shape[1]

    if use_pallas:
        y = stickbreaking_att_pallas(q, k, v, n_head=n_head)          # (B,T,K,Ah)
    else:
        qh = q.reshape(B, T, top_k, n_head, head_size)
        kh = k.reshape(B, ctx, n_head, head_size)
        vh = v.reshape(B, ctx, n_head, head_size)
        tril_ones = jnp.tril(jnp.ones((ctx, ctx), dtype=x.dtype))
        mask = tril_ones[ctx - T:]                  # (T, ctx)
        cum_weight = jnp.tril(tril_ones, -1)        # (ctx, ctx)
        y = stickbreaking_att_ref(qh, kh, vh, mask, cum_weight)
        y = y.reshape(B, T, top_k, att_hidden)

    # q_proj.reduce
    y = moe_reduce(y.astype(x.dtype), gates, top_idx, params["expert_w_out"])
    return y.reshape(B, T, C), aux_loss, new_hidden


# ----------------------------------------------------------------------------
# main
# ----------------------------------------------------------------------------
if __name__ == "__main__":
    # config (small, consistent with the module)
    B, T = 2, 8
    n_embd = 32
    att_hidden = 32
    n_head = 4            # head_size = 8
    n_att_experts = 4
    top_k = 2             # k_att
    history_length = 0

    # deterministic inputs
    x = jax.random.normal(jax.random.PRNGKey(0), (B, T, n_embd), dtype=jnp.float32)

    # deterministic parameter init (synthetic; no checkpoint load)
    pkeys = jax.random.split(jax.random.PRNGKey(1), 6)
    s_in = 1.0 / math.sqrt(n_embd)
    s_ah = 1.0 / math.sqrt(att_hidden)
    params = {
        "gate_w": jax.random.normal(pkeys[0], (n_embd, n_att_experts), jnp.float32) * s_in,
        "expert_w_in": jax.random.normal(pkeys[1], (n_att_experts, n_embd, att_hidden), jnp.float32) * s_in,
        "expert_w_out": jax.random.normal(pkeys[2], (n_att_experts, att_hidden, n_embd), jnp.float32) * s_ah,
        "k_w": jax.random.normal(pkeys[3], (att_hidden, n_embd), jnp.float32) * s_in,
        "k_b": jax.random.normal(pkeys[4], (att_hidden,), jnp.float32) * 0.02,
        "v_w": jax.random.normal(pkeys[5], (att_hidden, n_embd), jnp.float32) * s_in,
        "v_b": jnp.zeros((att_hidden,), jnp.float32),
    }

    y, aux_loss, hidden = sparse_causal_self_attention(
        params, x, None, n_head=n_head, top_k=top_k, use_pallas=True)
    jax.block_until_ready(y)

    # correctness check against a pure-JAX reference of the same forward
    # (reference mirrors the bf16-at-the-MXU casts; elementwise math stays f32)
    y_ref, _, _ = sparse_causal_self_attention(
        params, x, None, n_head=n_head, top_k=top_k, use_pallas=False)
    jax.block_until_ready(y_ref)

    assert y.shape == (B, T, n_embd)
    max_err = float(jnp.max(jnp.abs(y - y_ref)))
    assert jnp.allclose(y, y_ref, rtol=2e-2, atol=2e-2), f"Pallas output mismatch (max_err={max_err})"

    print("KERNEL_OK")
</pallas_src>

<mosaic_0001>
module attributes {stable_mosaic.version = 11 : i64} {
  func.func @kernel(%arg0: i32, %arg1: i32, %arg2: i32, %arg3: memref<16x32xf32, #tpu.memory_space<vmem>>, %arg4: memref<64x32xf32, #tpu.memory_space<vmem>>, %arg5: memref<1x64xf32, #tpu.memory_space<vmem>>, %arg6: memref<16x64xf32, #tpu.memory_space<vmem>>, %arg7: memref<16x64xf32, #tpu.memory_space<vmem>>) attributes {dimension_semantics = [#tpu.dimension_semantics<parallel>, #tpu.dimension_semantics<parallel>, #tpu.dimension_semantics<arbitrary>], iteration_bounds = array<i64: 1, 1, 1>, scalar_prefetch = 0 : i64, scratch_operands = 1 : i64, tpu.core_type = #tpu.core_type<tc>, window_params = [{transform_indices = @transform_0, window_bounds = array<i64: 16, 32>}, {transform_indices = @transform_1, window_bounds = array<i64: 64, 32>}, {transform_indices = @transform_2, window_bounds = array<i64: 1, 64>}, {transform_indices = @transform_3, window_bounds = array<i64: 16, 64>}]} {
    %c0_i32 = arith.constant 0 : i32
    %0 = arith.cmpi eq, %arg2, %c0_i32 : i32
    %1 = arith.extui %0 : i1 to i32
    %c0_i32_0 = arith.constant 0 : i32
    %2 = arith.cmpi ne, %1, %c0_i32_0 : i32
    scf.if %2 {
      %cst_10 = arith.constant 0.000000e+00 : f32
      %14 = vector.broadcast %cst_10 : f32 to vector<16x64xf32>
      %c0_11 = arith.constant 0 : index
      %c0_12 = arith.constant 0 : index
      %15 = vector.load %arg7[%c0_11, %c0_12] : memref<16x64xf32, #tpu.memory_space<vmem>>, vector<16x64xf32>
      tpu.vector_store %arg7[%c0_11, %c0_12], %14 {strides = array<i32>} : memref<16x64xf32, #tpu.memory_space<vmem>>, vector<16x64xf32>,
    } else {
    }
    %c0 = arith.constant 0 : index
    %c0_1 = arith.constant 0 : index
    %3 = vector.load %arg7[%c0, %c0_1] : memref<16x64xf32, #tpu.memory_space<vmem>>, vector<16x64xf32>
    %c0_2 = arith.constant 0 : index
    %c0_3 = arith.constant 0 : index
    %4 = vector.load %arg3[%c0_2, %c0_3] : memref<16x32xf32, #tpu.memory_space<vmem>>, vector<16x32xf32>
    %5 = arith.truncf %4 : vector<16x32xf32> to vector<16x32xbf16>
    %c0_4 = arith.constant 0 : index
    %c0_5 = arith.constant 0 : index
    %6 = vector.load %arg4[%c0_4, %c0_5] : memref<64x32xf32, #tpu.memory_space<vmem>>, vector<64x32xf32>
    %7 = arith.truncf %6 : vector<64x32xf32> to vector<64x32xbf16>
    %cst = arith.constant dense<0.000000e+00> : vector<16x64xf32>
    %8 = tpu.matmul %5, %7, %cst {dimension_numbers = #tpu.dot_dimension_numbers<[1], [1], [0], [0], [0, 0, 1, 0], [], []>} : vector<16x32xbf16>, vector<64x32xbf16>, vector<16x64xf32> -> vector<16x64xf32>
    %9 = arith.addf %3, %8 : vector<16x64xf32>
    %c0_6 = arith.constant 0 : index
    %c0_7 = arith.constant 0 : index
    %10 = vector.load %arg7[%c0_6, %c0_7] : memref<16x64xf32, #tpu.memory_space<vmem>>, vector<16x64xf32>
    tpu.vector_store %arg7[%c0_6, %c0_7], %9 {strides = array<i32>} : memref<16x64xf32, #tpu.memory_space<vmem>>, vector<16x64xf32>,
    %c0_i32_8 = arith.constant 0 : i32
    %11 = arith.cmpi eq, %arg2, %c0_i32_8 : i32
    %12 = arith.extui %11 : i1 to i32
    %c0_i32_9 = arith.constant 0 : i32
    %13 = arith.cmpi ne, %12, %c0_i32_9 : i32
    scf.if %13 {
      %c0_10 = arith.constant 0 : index
      %c0_11 = arith.constant 0 : index
      %14 = vector.load %arg7[%c0_10, %c0_11] : memref<16x64xf32, #tpu.memory_space<vmem>>, vector<16x64xf32>
      %c0_12 = arith.constant 0 : index
      %c0_13 = arith.constant 0 : index
      %15 = vector.load %arg5[%c0_12, %c0_13] : memref<1x64xf32, #tpu.memory_space<vmem>>, vector<1x64xf32>
      %16 = vector.broadcast %15 : vector<1x64xf32> to vector<16x64xf32>
      %17 = arith.addf %14, %16 : vector<16x64xf32>
      %c0_14 = arith.constant 0 : index
      %c0_15 = arith.constant 0 : index
      %18 = vector.load %arg6[%c0_14, %c0_15] : memref<16x64xf32, #tpu.memory_space<vmem>>, vector<16x64xf32>
      tpu.vector_store %arg6[%c0_14, %c0_15], %17 {strides = array<i32>} : memref<16x64xf32, #tpu.memory_space<vmem>>, vector<16x64xf32>,
    } else {
    }
    return
  }
  func.func @transform_0(%arg0: i32, %arg1: i32, %arg2: i32) -> (i32, i32) {
    %c0_i32 = arith.constant 0 : i32
    return %arg0, %arg2 : i32, i32
  }
  func.func @transform_1(%arg0: i32, %arg1: i32, %arg2: i32) -> (i32, i32) {
    %c0_i32 = arith.constant 0 : i32
    return %arg1, %arg2 : i32, i32
  }
  func.func @transform_2(%arg0: i32, %arg1: i32, %arg2: i32) -> (i32, i32) {
    %c0_i32 = arith.constant 0 : i32
    %c0_i32_0 = arith.constant 0 : i32
    return %c0_i32, %arg1 : i32, i32
  }
  func.func @transform_3(%arg0: i32, %arg1: i32, %arg2: i32) -> (i32, i32) {
    %c0_i32 = arith.constant 0 : i32
    return %arg0, %arg1 : i32, i32
  }
}

</mosaic_0001>

<bundles_post_ra>
// kernel: tpu_custom_call.1
= control target key start
LH: loop header
LB: loop body
LE: loop exit
PB: predicated region body
PF: predicated region fallthrough
CT: control target
= control target key end

     0   :  { %vm40_vm0 = vcmask 261120   ;;  %v182_v2 = vmov 0.0   ;;  %vm183_vm1 = vmmov 0   ;;  %vm20_vm2 = vcmask 523264   ;;  %s263_s0 = inlined_call_operand.vmem [shape: f32[16,32], index: 0, kind: input, shape index: {}]   ;;  %s264_s1 = inlined_call_operand.vmem [shape: f32[64,32], index: 1, kind: input, shape index: {}]   ;;  %s265_s2 = inlined_call_operand.vmem [shape: f32[1,64], index: 2, kind: input, shape index: {}]   ;;  %s266_s3 = inlined_call_operand.hbm [shape: f32[16,64], index: 3, kind: output, shape index: {}]  }
   0x1   :  { %v28_v0 = vld [vmem:[%s264_s1] sm:$0xff]  ;;  %v29_v1 = vld [vmem:[%s264_s1 + $0x8] sm:$0xff]  ;;  %141 = vmatprep.subr.bf16.mxu0 %v182_v2  ;;  %149 = vmatprep.mubr.msk.bf16.mxu0 %vm183_vm1, %v182_v2  ;;  %v30_v4 = vld [vmem:[%s264_s1 + $0x10] sm:$0xff]  ;;  %21 = vst.msk [vmem:[#allocation2] sm:$0xff] %vm20_vm2, %v182_v2 }
   0x2   :  { %v36_v3 = vpack.c.bf16 %v29_v1, %v28_v0  ;;  %v31_v5 = vld [vmem:[%s264_s1 + $0x18] sm:$0xff]  ;;  %22 = vst.msk [vmem:[#allocation2 + $0x8] sm:$0xff] %vm20_vm2, %v182_v2 }
   0x4   :  { %v45_v6 = vsel %vm40_vm0, %v36_v3, 0 }
   0x5   :  { %8 = vsyncpa [#allocation4], 0  ;;  %142 = vmatpush3.bf16.xpose.msra.mxu0 %v45_v6  ;;  %v37_v7 = vpack.c.bf16 %v31_v5, %v30_v4  ;;  %v32_v9 = vld [vmem:[%s264_s1 + $0x20] sm:$0xff]  ;;  %v33_v10 = vld [vmem:[%s264_s1 + $0x28] sm:$0xff] }
   0x6   :  { %143 = vmatprep.subr.bf16.mxu0 %v182_v2  ;;  %v38_v11 = vpack.c.bf16 %v33_v10, %v32_v9  ;;  %v34_v13 = vld [vmem:[%s264_s1 + $0x30] sm:$0xff]  ;;  %v35_v14 = vld [vmem:[%s264_s1 + $0x38] sm:$0xff]  ;;  %v25_v17 = vld [vmem:[%s263_s0] sm:$0xff] }
   0x7   :  { %v48_v8 = vsel %vm40_vm0, %v37_v7, 0  ;;  %v39_v15 = vpack.c.bf16 %v35_v14, %v34_v13  ;;  %v26_v18 = vld [vmem:[%s263_s0 + $0x8] sm:$0xff]  ;;  %v135_v28 = vld [vmem:[%s265_s2] ss:$0 sm:$0xff]  ;;  %s184_s0 = smov [#allocation3]  }
   0x8   :  { %v51_v12 = vsel %vm40_vm0, %v38_v11, 0  ;;  %v27_v19 = vpack.c.bf16 %v26_v18, %v25_v17  ;;  %v23_v20 = vld [vmem:[#allocation2] sm:$0xff]  ;;  %s123_s6 = sshll.u32 %s184_s0, 4  ;;  %s124_s6 = int_to_ptr.vmem [resolvable:$true] %s123_s6 }
   0x9   :  { %v54_v16 = vsel %vm40_vm0, %v39_v15, 0  ;;  %v24_v22 = vld [vmem:[#allocation2 + $0x8] sm:$0xff]  ;;  %s158_s7 = scalar_lea.vmem %s124_s6, 256  ;;  %p163_p1 = scmp.lt.s32.totalorder %s124_s6, %s124_s6 }
   0xa   :  { %p159_p0 = scmp.ne.s32.totalorder %s124_s6, %s158_s7  ;;  %p164_p2 = scmp.lt.s32.totalorder %s158_s7, %s158_s7 }
   0xc   :  { %p165_p3 = por %p164_p2, %p163_p1 }
   0xd   :  { %144 = vmatpush3.bf16.xpose.msra.mxu0 %v48_v8 }
   0xe   :  { %145 = vmatprep.subr.bf16.mxu0 %v182_v2  ;;  %p166_p4 = pnand %p165_p3, %p159_p0 }
  0x15   :  { %146 = vmatpush3.bf16.xpose.msra.mxu0 %v51_v12 }
  0x16   :  { %147 = vmatprep.subr.bf16.mxu0 %v182_v2 }
  0x1d   :  { %148 = vmatpush3.bf16.xpose.msra.mxu0 %v54_v16 }
  0x24   :  { %150 = vmatmul.mubr.msk.bf16.vlgmr.msra.gmra.mrb[0].mxu0 %vm40_vm0, %v27_v19 }
  0xf7   :  { %v90_v21 = vpop.f32.mrb[0].mxu0 }
  0xf8   :  { %v97_v23 = vadd.f32 %v90_v21, %v23_v20  ;;  %v151_v24 = vpop.f32.mrb[1].mxu0 }
  0xf9   :  { %v93_v25 = vpop.f32.mrb[2].mxu0 }
  0xfa   :  { %100 = vst.msk [vmem:[#allocation2] sm:$0xff] %vm20_vm2, %v97_v23  ;;  %v98_v26 = vadd.f32 %v93_v25, %v24_v22  ;;  %v152_v27 = vpop.f32.mrb[3].mxu0 }
  0xfc   :  { %101 = vst.msk [vmem:[#allocation2 + $0x8] sm:$0xff] %vm20_vm2, %v98_v26 }
 0x101   :  { %v105_v29 = vld [vmem:[#allocation2] sm:$0xff] }
 0x102   :  { %v114_v30 = vadd.f32 %v135_v28, %v105_v29 }
 0x103   :  { %v106_v31 = vld [vmem:[#allocation2 + $0x8] sm:$0xff] }
 0x104   :  { %v115_v32 = vadd.f32 %v135_v28, %v106_v31  ;;  %116 = vst.msk [vmem:[#allocation3] sm:$0xff] %vm20_vm2, %v114_v30 }
 0x106   :  { %117 = vst.msk [vmem:[#allocation3 + $0x8] sm:$0xff] %vm20_vm2, %v115_v32 }
 0x107   :  { %169 = shalt.err (!%p166_p4)
}
 0x108   :  { %s170_s9 = scalar_lea.hbm %s266_s3, 256 }
 0x109   :  { %p171_p5 = scmp.ne.s32.totalorder %s266_s3, %s170_s9  ;;  %p174_p6 = scmp.lt.u32.totalorder %s170_s9, %s266_s3 }
 0x10b   :  { %p176_p7 = pnand %p174_p6, %p171_p5 }
 0x10d   :  { %179 = shalt.err (!%p176_p7)
}
 0x10e   :  { %s185_s14 = smov 128   ;;  %s186_s15 = smov 8  }
 0x10f   :  { %129 = dma.vmem_to_hbm [thread:$0]  %s124_s6, 256, %s266_s3, [#allocation4], %s185_s14, %s185_s14, %s186_s15  }
 0x110   :  { %180 = dma.done.wait [#allocation4], 256  }
 0x111   :  { %181 = vsyncadd [#allocation4], 4294967040 }
 0x112   :  { %133 = vsyncpa [#allocation4], 1 }

</bundles_post_ra>
